<compile_context>
chip_gen: v5e
topology: v5e:2x2
jax: 0.10.0
libtpu: 0.0.40
codegen_flags: <defaults>
</compile_context>

<pallas_src>
import functools

import numpy as np
import jax
import jax.numpy as jnp
from jax.experimental import pallas as pl
from jax.experimental.pallas import tpu as pltpu


# ----------------------------------------------------------------------------
# Pallas kernel
# ----------------------------------------------------------------------------
def _stft_dropout_kernel(frames_ref, wfwd_ref, mask_ref, winv_ref, out_ref):
    """One (TM rows) x (TF spectral columns) tile, accumulated over the f axis.

    frames_ref: (TM, n_fft)   bf16  raw (un-windowed) frames
    wfwd_ref  : (n_fft, TF)   bf16  forward DFT slice (analysis window folded in)
    mask_ref  : (TM, TF)      bf16  binary keep mask (re/im halves share columns)
    winv_ref  : (TF, n_fft)   bf16  inverse DFT slice (synthesis window, 1/N and
                                     the 1/(1-p) dropout scale folded in)
    out_ref   : (TM, n_fft)   f32   windowed time-domain frames (pre overlap-add)
    """
    @pl.when(pl.program_id(1) == 0)
    def _():
        out_ref[...] = jnp.zeros_like(out_ref)

    spec = jnp.dot(frames_ref[...], wfwd_ref[...],
                   preferred_element_type=jnp.float32)
    spec = spec * mask_ref[...].astype(jnp.float32)
    out_ref[...] += jnp.dot(spec.astype(jnp.bfloat16), winv_ref[...],
                            preferred_element_type=jnp.float32)


# ----------------------------------------------------------------------------
# Trace-time (numpy) constants
# ----------------------------------------------------------------------------
def _round_up(a, b):
    return ((a + b - 1) // b) * b


def _hann_window_np(win_length):
    # torch.hann_window default is periodic=True
    n = np.arange(win_length, dtype=np.float64)
    return 0.5 * (1.0 - np.cos(2.0 * np.pi * n / win_length))


def _dft_matrices_np(n_fft, window, f_pad, inv_scale):
    """Forward / inverse onesided-DFT matrices, windows folded in, lane-padded."""
    n_freq = n_fft // 2 + 1
    n = np.arange(n_fft, dtype=np.float64)
    k = np.arange(n_freq, dtype=np.float64)
    ang = 2.0 * np.pi * np.outer(k, n) / float(n_fft)      # (n_freq, n_fft)
    cos, sin = np.cos(ang), np.sin(ang)
    w = window[None, :]

    # Forward: X[k] = sum_n w[n] x[n] e^{-i 2 pi k n / N}; columns = [re | im].
    w_fwd = np.zeros((n_fft, 2 * f_pad), dtype=np.float64)
    w_fwd[:, :n_freq] = (w * cos).T
    w_fwd[:, f_pad:f_pad + n_freq] = (-w * sin).T

    # Inverse (onesided irfft) * synthesis window; DC/Nyquist weight 1, else 2.
    weight = np.where((k == 0) | (k == n_fft // 2), 1.0, 2.0)[:, None]
    w_inv = np.zeros((2 * f_pad, n_fft), dtype=np.float64)
    w_inv[:n_freq, :] = weight * cos * w / float(n_fft)
    w_inv[f_pad:f_pad + n_freq, :] = -(weight * sin) * w / float(n_fft)
    w_inv *= inv_scale                                     # fold in 1/(1-p)
    return w_fwd, w_inv


def _inv_envelope_np(window, n_frames, hop, t_pad, pad, length):
    """1 / sum_f window^2 shifted by f*hop, cropped to [pad, pad+length)."""
    wsq = np.zeros(t_pad, dtype=np.float64)
    w2 = window ** 2
    n_fft = window.shape[0]
    for f in range(n_frames):
        wsq[f * hop:f * hop + n_fft] += w2
    env = np.where(wsq > 1e-11, wsq, 1.0)
    return (1.0 / env)[pad:pad + length].astype(np.float32)


def _choose_tf(f_pad, cap=512):
    """Largest multiple of 128 that divides f_pad and is <= cap."""
    q = f_pad // 128
    d = 1
    for c in range(1, q + 1):
        if q % c == 0 and 128 * c <= cap:
            d = c
    return 128 * d


# ----------------------------------------------------------------------------
# Public entry point
# ----------------------------------------------------------------------------
@functools.partial(jax.jit, static_argnames=("p", "hop_length", "win_length", "n_fft"))
def stft_dropout_augmentation(x, rng_key, *, p=0.001, hop_length=512,
                              win_length=2048, n_fft=2048):
    """x: (B, 1, T) float32 -> (B, 1, T) float32."""
    assert x.ndim == 3 and x.shape[1] == 1, "expected mono (B, 1, T) input"
    # TODO(synk): win_length < n_fft (zero-padded window) is not implemented.
    assert win_length == n_fft, "this implementation assumes win_length == n_fft"
    assert n_fft % 2 == 0

    B, _, T = x.shape
    hop = hop_length
    n_freq = n_fft // 2 + 1
    pad = n_fft // 2
    f_pad = _round_up(n_freq, 128)           # lane-aligned half-spectrum width
    tf = _choose_tf(f_pad)                   # frequency tile (multiple of 128)
    n_mask_tiles = f_pad // tf
    inv_keep = 1.0 / (1.0 - p)

    # ---- trace-time constants: window, DFT matrices (bf16), inverse envelope ----
    window_np = _hann_window_np(win_length)
    w_fwd_np, w_inv_np = _dft_matrices_np(n_fft, window_np, f_pad, inv_keep)
    w_fwd = jnp.asarray(w_fwd_np, dtype=jnp.bfloat16)       # (n_fft, 2*f_pad)
    w_inv = jnp.asarray(w_inv_np, dtype=jnp.bfloat16)       # (2*f_pad, n_fft)

    # ---- framing (glue): reflect pad + slice-based frame matrix ----
    xs = x[:, 0, :].astype(jnp.float32)                      # (B, T)
    x_pad = jnp.pad(xs, ((0, 0), (pad, pad)), mode="reflect")
    t_pad = T + 2 * pad
    n_frames = 1 + (t_pad - n_fft) // hop

    if n_fft % hop == 0:
        # Frame f = concat of R consecutive hop-sized chunks -> no gather op.
        R = n_fft // hop
        n_chunks = n_frames + R - 1
        x_chunks = x_pad[:, :n_chunks * hop].reshape(B, n_chunks, hop)
        frames = jnp.concatenate(
            [x_chunks[:, r:r + n_frames, :] for r in range(R)], axis=2)
    else:
        # TODO(synk): general hop falls back to an XLA gather (4x HBM expansion).
        idx = (jnp.arange(n_frames)[:, None] * hop + jnp.arange(n_fft)[None, :])
        frames = x_pad[:, idx]

    m_rows = B * n_frames
    frames = frames.reshape(m_rows, n_fft).astype(jnp.bfloat16)

    # ---- dropout keep-mask: one binary value per (frame, freq-bin) ----
    # TODO(synk): RNG stream differs from PyTorch's dropout RNG (uses jax.random).
    keep = jax.random.bernoulli(rng_key, 1.0 - p, (m_rows, n_freq))
    mask = keep.astype(jnp.bfloat16)
    mask = jnp.pad(mask, ((0, 0), (0, f_pad - n_freq)))      # zero-pad padded bins

    # ---- pad rows to the M tile (big tiles: fill the MXU, few grid steps) ----
    tm = min(256, _round_up(m_rows, 16))
    m_pad_rows = _round_up(m_rows, tm)
    frames = jnp.pad(frames, ((0, m_pad_rows - m_rows), (0, 0)))
    mask = jnp.pad(mask, ((0, m_pad_rows - m_rows), (0, 0)))

    grid = (m_pad_rows // tm, (2 * f_pad) // tf)

    out_frames = pl.pallas_call(
        _stft_dropout_kernel,
        out_shape=jax.ShapeDtypeStruct((m_pad_rows, n_fft), jnp.float32),
        grid=grid,
        in_specs=[
            pl.BlockSpec((tm, n_fft), lambda i, f: (i, 0)),
            pl.BlockSpec((n_fft, tf), lambda i, f: (0, f)),
            pl.BlockSpec((tm, tf),
                         lambda i, f, n=n_mask_tiles: (i, f % n)),
            pl.BlockSpec((tf, n_fft), lambda i, f: (f, 0)),
        ],
        out_specs=pl.BlockSpec((tm, n_fft), lambda i, f: (i, 0)),
        compiler_params=pltpu.CompilerParams(
            dimension_semantics=("parallel", "arbitrary"),
            vmem_limit_bytes=32 * 1024 * 1024),
    )(frames, w_fwd, mask, w_inv)

    out_frames = out_frames[:m_rows].reshape(B, n_frames, n_fft)

    # ---- overlap-add: R dense shifted adds instead of a scatter-add ----
    if n_fft % hop == 0:
        R = n_fft // hop
        L = (n_frames + R - 1) * hop
        ola = jnp.zeros((B, L), jnp.float32)
        for r in range(R):
            chunk = out_frames[:, :, r * hop:(r + 1) * hop]
            chunk = chunk.reshape(B, n_frames * hop)
            ola = ola + jnp.pad(chunk, ((0, 0), (r * hop, (R - 1 - r) * hop)))
        if L < pad + T:
            ola = jnp.pad(ola, ((0, 0), (0, pad + T - L)))
    else:
        ola = jnp.zeros((B, t_pad), jnp.float32).at[:, idx].add(out_frames)

    # ---- window-envelope normalization (static constant) + crop ----
    inv_env = jnp.asarray(_inv_envelope_np(window_np, n_frames, hop, t_pad, pad, T))
    y = ola[:, pad:pad + T] * inv_env[None, :]
    return y[:, None, :]


# ----------------------------------------------------------------------------
# Pure-numpy float64 reference (torch.stft/istft semantics) for validation
# ----------------------------------------------------------------------------
def _reference_np(x, keep, *, p, hop_length, win_length, n_fft):
    x = np.asarray(x, dtype=np.float64)
    keep = np.asarray(keep, dtype=np.float64)
    B, _, T = x.shape
    pad = n_fft // 2
    window = _hann_window_np(win_length)
    xs = x[:, 0, :]
    x_pad = np.pad(xs, ((0, 0), (pad, pad)), mode="reflect")
    t_pad = T + 2 * pad
    n_frames = 1 + (t_pad - n_fft) // hop_length
    idx = np.arange(n_frames)[:, None] * hop_length + np.arange(n_fft)[None, :]
    frames = x_pad[:, idx] * window[None, None, :]
    X = np.fft.rfft(frames, axis=-1)
    X = X * (keep.reshape(B, n_frames, -1) / (1.0 - p))
    fr = np.fft.irfft(X, n=n_fft, axis=-1) * window[None, None, :]
    ola = np.zeros((B, t_pad))
    wsq = np.zeros(t_pad)
    for f in range(n_frames):
        ola[:, f * hop_length:f * hop_length + n_fft] += fr[:, f]
        wsq[f * hop_length:f * hop_length + n_fft] += window ** 2
    env = np.where(wsq > 1e-11, wsq, 1.0)
    y = (ola / env[None, :])[:, pad:pad + T]
    return y[:, None, :]


if __name__ == "__main__":
    # Small shapes consistent with the module's forward semantics.
    B, T = 2, 256
    n_fft = win_length = 64
    hop_length = 16
    p = 0.001

    key = jax.random.PRNGKey(0)
    k_x, k_mask = jax.random.split(key)
    x = jax.random.normal(k_x, (B, 1, T), dtype=jnp.float32)

    y = stft_dropout_augmentation(
        x, k_mask, p=p, hop_length=hop_length,
        win_length=win_length, n_fft=n_fft)
    y = jax.block_until_ready(y)

    assert y.shape == (B, 1, T), y.shape
    assert bool(jnp.all(jnp.isfinite(y)))

    # Reference check (same mask bits regenerated from the same key).
    n_freq = n_fft // 2 + 1
    n_frames = 1 + T // hop_length
    keep = jax.random.bernoulli(k_mask, 1.0 - p, (B * n_frames, n_freq))
    y_ref = _reference_np(x, keep, p=p, hop_length=hop_length,
                          win_length=win_length, n_fft=n_fft)
    rel = float(jnp.linalg.norm(y - y_ref) / (jnp.linalg.norm(y_ref) + 1e-12))
    assert rel < 3e-2, f"relative error vs reference too large: {rel}"

    # With tiny dropout prob the augmentation is near-identity: sanity check.
    assert float(jnp.max(jnp.abs(y - x))) < 0.75, float(jnp.max(jnp.abs(y - x)))

    print("KERNEL_OK")
</pallas_src>

<mosaic_0001>
module attributes {stable_mosaic.version = 11 : i64} {
  func.func @_stft_dropout_kernel(%arg0: i32, %arg1: i32, %arg2: memref<48x64xbf16, #tpu.memory_space<vmem>>, %arg3: memref<64x128xbf16, #tpu.memory_space<vmem>>, %arg4: memref<48x128xbf16, #tpu.memory_space<vmem>>, %arg5: memref<128x64xbf16, #tpu.memory_space<vmem>>, %arg6: memref<48x64xf32, #tpu.memory_space<vmem>>) attributes {dimension_semantics = [#tpu.dimension_semantics<parallel>, #tpu.dimension_semantics<arbitrary>], iteration_bounds = array<i64: 1, 2>, scalar_prefetch = 0 : i64, scratch_operands = 0 : i64, tpu.core_type = #tpu.core_type<tc>, window_params = [{transform_indices = @transform_0, window_bounds = array<i64: 48, 64>}, {transform_indices = @transform_1, window_bounds = array<i64: 64, 128>}, {transform_indices = @transform_2, window_bounds = array<i64: 48, 128>}, {transform_indices = @transform_3, window_bounds = array<i64: 128, 64>}, {transform_indices = @transform_4, window_bounds = array<i64: 48, 64>}]} {
    %c0_i32 = arith.constant 0 : i32
    %0 = arith.cmpi eq, %arg1, %c0_i32 : i32
    %1 = arith.extui %0 : i1 to i32
    %c0_i32_0 = arith.constant 0 : i32
    %2 = arith.cmpi ne, %1, %c0_i32_0 : i32
    scf.if %2 {
      %cst_13 = arith.constant 0.000000e+00 : f32
      %15 = vector.broadcast %cst_13 : f32 to vector<48x64xf32>
      %c0_14 = arith.constant 0 : index
      %c0_15 = arith.constant 0 : index
      %16 = vector.load %arg6[%c0_14, %c0_15] : memref<48x64xf32, #tpu.memory_space<vmem>>, vector<48x64xf32>
      tpu.vector_store %arg6[%c0_14, %c0_15], %15 {strides = array<i32>} : memref<48x64xf32, #tpu.memory_space<vmem>>, vector<48x64xf32>,
    } else {
    }
    %c0 = arith.constant 0 : index
    %c0_1 = arith.constant 0 : index
    %3 = vector.load %arg2[%c0, %c0_1] : memref<48x64xbf16, #tpu.memory_space<vmem>>, vector<48x64xbf16>
    %c0_2 = arith.constant 0 : index
    %c0_3 = arith.constant 0 : index
    %4 = vector.load %arg3[%c0_2, %c0_3] : memref<64x128xbf16, #tpu.memory_space<vmem>>, vector<64x128xbf16>
    %cst = arith.constant dense<0.000000e+00> : vector<48x128xf32>
    %5 = tpu.matmul %3, %4, %cst {dimension_numbers = #tpu.dot_dimension_numbers<[1], [0], [0], [1], [0, 0, 1, 1], [], []>} : vector<48x64xbf16>, vector<64x128xbf16>, vector<48x128xf32> -> vector<48x128xf32>
    %c0_4 = arith.constant 0 : index
    %c0_5 = arith.constant 0 : index
    %6 = vector.load %arg4[%c0_4, %c0_5] : memref<48x128xbf16, #tpu.memory_space<vmem>>, vector<48x128xbf16>
    %7 = arith.extf %6 : vector<48x128xbf16> to vector<48x128xf32>
    %8 = arith.mulf %5, %7 : vector<48x128xf32>
    %c0_6 = arith.constant 0 : index
    %c0_7 = arith.constant 0 : index
    %9 = vector.load %arg6[%c0_6, %c0_7] : memref<48x64xf32, #tpu.memory_space<vmem>>, vector<48x64xf32>
    %10 = arith.truncf %8 : vector<48x128xf32> to vector<48x128xbf16>
    %c0_8 = arith.constant 0 : index
    %c0_9 = arith.constant 0 : index
    %11 = vector.load %arg5[%c0_8, %c0_9] : memref<128x64xbf16, #tpu.memory_space<vmem>>, vector<128x64xbf16>
    %cst_10 = arith.constant dense<0.000000e+00> : vector<48x64xf32>
    %12 = tpu.matmul %10, %11, %cst_10 {dimension_numbers = #tpu.dot_dimension_numbers<[1], [0], [0], [1], [0, 0, 1, 1], [], []>} : vector<48x128xbf16>, vector<128x64xbf16>, vector<48x64xf32> -> vector<48x64xf32>
    %13 = arith.addf %9, %12 : vector<48x64xf32>
    %c0_11 = arith.constant 0 : index
    %c0_12 = arith.constant 0 : index
    %14 = vector.load %arg6[%c0_11, %c0_12] : memref<48x64xf32, #tpu.memory_space<vmem>>, vector<48x64xf32>
    tpu.vector_store %arg6[%c0_11, %c0_12], %13 {strides = array<i32>} : memref<48x64xf32, #tpu.memory_space<vmem>>, vector<48x64xf32>,
    return
  }
  func.func @transform_0(%arg0: i32, %arg1: i32) -> (i32, i32) {
    %c0_i32 = arith.constant 0 : i32
    %c0_i32_0 = arith.constant 0 : i32
    return %arg0, %c0_i32 : i32, i32
  }
  func.func @transform_1(%arg0: i32, %arg1: i32) -> (i32, i32) {
    %c0_i32 = arith.constant 0 : i32
    %c0_i32_0 = arith.constant 0 : i32
    return %c0_i32, %arg1 : i32, i32
  }
  func.func @transform_2(%arg0: i32, %arg1: i32) -> (i32, i32) {
    %c1_i32 = arith.constant 1 : i32
    %c0_i32 = arith.constant 0 : i32
    %0 = arith.cmpi eq, %c1_i32, %c0_i32 : i32
    %c1_i32_0 = arith.constant 1 : i32
    %1 = arith.select %0, %c1_i32_0, %c1_i32 : i32
    %2 = arith.remsi %arg1, %1 : i32
    %c0_i32_1 = arith.constant 0 : i32
    %3 = arith.cmpi ne, %2, %c0_i32_1 : i32
    %c0_i32_2 = arith.constant 0 : i32
    %4 = arith.cmpi slt, %2, %c0_i32_2 : i32
    %c0_i32_3 = arith.constant 0 : i32
    %5 = arith.cmpi slt, %1, %c0_i32_3 : i32
    %6 = arith.xori %4, %5 : i1
    %7 = arith.andi %6, %3 : i1
    %8 = arith.addi %2, %1 : i32
    %9 = arith.select %7, %8, %2 : i32
    %c0_i32_4 = arith.constant 0 : i32
    return %arg0, %9 : i32, i32
  }
  func.func @transform_3(%arg0: i32, %arg1: i32) -> (i32, i32) {
    %c0_i32 = arith.constant 0 : i32
    %c0_i32_0 = arith.constant 0 : i32
    return %arg1, %c0_i32 : i32, i32
  }
  func.func @transform_4(%arg0: i32, %arg1: i32) -> (i32, i32) {
    %c0_i32 = arith.constant 0 : i32
    %c0_i32_0 = arith.constant 0 : i32
    return %arg0, %c0_i32 : i32, i32
  }
}

</mosaic_0001>

<bundles_post_ra>
// kernel: stft_dropout_augmentation.1
= control target key start
LH: loop header
LB: loop body
LE: loop exit
PB: predicated region body
PF: predicated region fallthrough
CT: control target
= control target key end

     0   :  { %s911_s15 = smov 0   ;;  %s913_s16 = smov 0   ;;  %s1068_s0 = inlined_call_operand.vmem [shape: bf16[48,64], index: 0, kind: input, shape index: {}]   ;;  %s1069_s1 = inlined_call_operand.vmem [shape: bf16[64,256], index: 1, kind: input, shape index: {}]   ;;  %s1070_s2 = inlined_call_operand.vmem [shape: bf16[48,128], index: 2, kind: input, shape index: {}]   ;;  %s1071_s3 = inlined_call_operand.vmem [shape: bf16[256,64], index: 3, kind: input, shape index: {}]   ;;  %s1072_s4 = inlined_call_operand.vmem [shape: f32[48,64], index: 4, kind: output, shape index: {}]  }
   0x1   :  { %s915_s17 = smov 0   ;;  %s917_s18 = smov 0  }
   0x2   :  { %s919_s19 = smov 0  }
   0x3 LB: > { %s23_s20 = sadd.s32 1, %s879_s18  ;;  %p66_p1 = scmp.ne.s32.totalorder %s871_s16, %s867_s15  ;;  %s883_s19 = sphi %s919_s19, %s14_s19   ;;  %s879_s18 = sphi %s917_s18, %s1076_s18   ;;  %s875_s17 = sphi %s915_s17, %s1075_s17   ;;  %s871_s16 = sphi %s913_s16, %s1074_s16   ;;  %s867_s15 = sphi %s911_s15, %s1073_s15  }
   0x4   : > { %p24_p0 = scmp.ge.s32.totalorder %s23_s20, 2  ;;  %p67_p2 = scmp.eq.s32.totalorder %s883_s19, 0 }
   0x5   : > { %s59_s22 = sadd.s32 1, %s871_s16  ;;  %p688_p5 = scmp.ge.s32.totalorder %s883_s19, 2 }
   0x6   : > { %s1078_s20 = smov (%p24_p0, %s23_s20), 0  ;;  %p68_p3 = por %p67_p2, %p66_p1 }
   0x7   : > { %s56_s21 = ssub.s32 %s879_s18, %s1078_s20  ;;  %188 = sbr.rel (%p688_p5) target bundleno = 24 (0x18), region = 24 }
   0x8   : > { %p57_p4 = scmp.eq.s32.totalorder %s56_s21, 0 }
   0xa   : > { %s946_s23 = scalar_select %p57_p4, %s871_s16, %s59_s22  }
   0xc   : > { %191 = sbr.rel (!%p68_p3) target bundleno = 24 (0x18), region = 28  ;;  %s193_s24 = sand.u32 (%p68_p3), 1, %s871_s16  }
   0xd   : > { %s690_s25 = sshll.u32 (%p68_p3), %s879_s18, 2  ;;  %s689_s26 = sshll.u32 (%p68_p3), %s193_s24, 5 }
   0xe   : > { %s197_s29 = scalar_lea.vmem (%p68_p3), %s1069_s1, %s690_s25  ;;  %s195_s30 = scalar_lea.vmem (%p68_p3), [#allocation2], %s689_s26 }
   0xf   : > { %v214_v0 = vld [vmem:[%s197_s29] sm:$0xf] (%p68_p3)  ;;  %v216_v1 = vld [vmem:[%s197_s29 + $0x8] sm:$0xf] (%p68_p3)  ;;  %v218_v2 = vld [vmem:[%s197_s29 + $0x10] sm:$0xf] (%p68_p3) }
  0x10   : > { %215 = vst [vmem:[%s195_s30] sm:$0xf] (%p68_p3), %v214_v0  ;;  %v220_v3 = vld [vmem:[%s197_s29 + $0x18] sm:$0xf] (%p68_p3)  ;;  %v222_v4 = vld [vmem:[%s197_s29 + $0x20] sm:$0xf] (%p68_p3) }
  0x11   : > { %217 = vst [vmem:[%s195_s30 + $0x4] sm:$0xf] %v216_v1  ;;  %v224_v5 = vld [vmem:[%s197_s29 + $0x28] sm:$0xf]  ;;  %v226_v6 = vld [vmem:[%s197_s29 + $0x30] sm:$0xf] }
  0x12   : > { %219 = vst [vmem:[%s195_s30 + $0x8] sm:$0xf] %v218_v2  ;;  %v228_v7 = vld [vmem:[%s197_s29 + $0x38] sm:$0xf] }
  0x13   : > { %221 = vst [vmem:[%s195_s30 + $0xc] sm:$0xf] %v220_v3 }
  0x14   : > { %223 = vst [vmem:[%s195_s30 + $0x10] sm:$0xf] %v222_v4 }
  0x15   : > { %225 = vst [vmem:[%s195_s30 + $0x14] sm:$0xf] %v224_v5 }
  0x16   : > { %227 = vst [vmem:[%s195_s30 + $0x18] sm:$0xf] %v226_v6 }
  0x17   : > { %229 = vst [vmem:[%s195_s30 + $0x1c] sm:$0xf] %v228_v7 }
  0x18 PF: > { %p691_p6 = scmp.ge.s32.totalorder %s883_s19, 1  ;;  %p277_p7 = scmp.lt.s32.totalorder %s883_s19, 3 }
  0x1a   : > { %p278_p8 = pnand %p691_p6, %p277_p7 }
  0x1b   : > { %s284_s5 = sand.u32 (!%p278_p8), 1, %s867_s15   ;;  %s693_s6 = sshll.u32 (!%p278_p8), %s875_s17, 4 }
  0x1c   : > { %281 = sbr.rel (%p278_p8) target bundleno = 364 (0x16c), region = 73  ;;  %s692_s7 = sshll.u32 (!%p278_p8), %s284_s5, 5 }
  0x1d   : > { %p337_p9 = scmp.lt.s32.totalorder (!%p278_p8), %s693_s6, 31  ;;  %s286_s12 = scalar_lea.vmem (!%p278_p8), [#allocation2], %s692_s7 }
  0x1e   : > { %p695_p10 = scmp.ne.s32.totalorder (!%p278_p8), %s875_s17, 0 }
  0x21   : > { %s1080_s6 = smov (!%p337_p9, %s693_s6), 31  ;;  %352 = sbr.rel (%p695_p10) target bundleno = 45 (0x2d), region = 81 }
  0x22   : > { %s694_s8 = sshll.u32 %s1080_s6, 2 }
  0x23   : > { %s961_s11 = scalar_lea.vmem %s1071_s3, %s694_s8 }
  0x26   : > { %vm353_vm0 = vcmask 523264   ;;  %v885_v8 = vmov 0.0  }
  0x27   : > { %354 = vst.msk [vmem:[%s1072_s4] sm:$0xff] %vm353_vm0, %v885_v8 }
  0x28   : > { %355 = vst.msk [vmem:[%s1072_s4 + $0x8] sm:$0xff] %vm353_vm0, %v885_v8 }
  0x29   : > { %356 = vst.msk [vmem:[%s1072_s4 + $0x10] sm:$0xff] %vm353_vm0, %v885_v8 }
  0x2a   : > { %357 = vst.msk [vmem:[%s1072_s4 + $0x18] sm:$0xff] %vm353_vm0, %v885_v8 }
  0x2b   : > { %358 = vst.msk [vmem:[%s1072_s4 + $0x20] sm:$0xff] %vm353_vm0, %v885_v8 }
  0x2c   : > { %359 = vst.msk [vmem:[%s1072_s4 + $0x28] sm:$0xff] %vm353_vm0, %v885_v8 }
  0x2d PF: > { %v769_v9 = vld [vmem:[%s286_s12 + $0x18] sm:$0xff]  ;;  %v768_v10 = vld [vmem:[%s286_s12 + $0x10] sm:$0xff]  ;;  %v767_v13 = vld [vmem:[%s286_s12 + $0x8] sm:$0xff]  ;;  %vm413_vm1 = vcmask 523264  }
  0x2e   : > { %792 = vmatpush.bf16.msra.mxu3 %v769_v9  ;;  %427 = vmatpush.bf16.msra.mxu0 %v769_v9  ;;  %v777_v11 = vld [vmem:[%s961_s11 + $0x38] sm:$0xff]  ;;  %v776_v12 = vld [vmem:[%s961_s11 + $0x30] sm:$0xff]  ;;  %v775_v14 = vld [vmem:[%s961_s11 + $0x28] sm:$0xff] }
  0x2f   : > { %796 = vmatpush.bf16.msra.mxu2 %v777_v11  ;;  %538 = vmatpush.bf16.msra.mxu1 %v777_v11  ;;  %v766_v15 = vld [vmem:[%s286_s12] sm:$0xff]  ;;  %v764_v17 = vld [vmem:[%s1068_s0 + $0x8] sm:$0xff]  ;;  %v773_v19 = vld [vmem:[%s961_s11 + $0x18] sm:$0xff] }
  0x30   : > { %v774_v16 = vld [vmem:[%s961_s11 + $0x20] sm:$0xff]  ;;  %v765_v20 = vld [vmem:[%s1068_s0 + $0x10] sm:$0xff]  ;;  %v771_v22 = vld [vmem:[%s961_s11 + $0x8] sm:$0xff] }
  0x31   : > { %v763_v18 = vld [vmem:[%s1068_s0] sm:$0xff]  ;;  %v772_v21 = vld [vmem:[%s961_s11 + $0x10] sm:$0xff]  ;;  %v790_v30 = vld [vmem:[%s1070_s2 + $0x8] sm:$0xff]  }
  0x32   : > { %793 = vmatpush.bf16.msra.mxu3 %v768_v10  ;;  %428 = vmatpush.bf16.msra.mxu0 %v768_v10  ;;  %v770_v23 = vld [vmem:[%s961_s11] sm:$0xff]  ;;  %v784_v33 = vunpack.c.l.bf16 %v790_v30  ;;  %v785_v34 = vunpack.c.h.bf16 %v790_v30  ;;  %v791_v41 = vld [vmem:[%s1070_s2 + $0x10] sm:$0xff]   ;;  %v466_v51 = vld [vmem:[%s1072_s4 + $0x8] sm:$0xff] }
  0x33   : > { %797 = vmatpush.bf16.msra.mxu2 %v776_v12  ;;  %539 = vmatpush.bf16.msra.mxu1 %v776_v12  ;;  %v779_v25 = vld [vmem:[%s1070_s2] sm:$0xff]   ;;  %v788_v42 = vunpack.c.l.bf16 %v791_v41  ;;  %v789_v43 = vunpack.c.h.bf16 %v791_v41  ;;  %v467_v54 = vld [vmem:[%s1072_s4 + $0x10] sm:$0xff]  ;;  %v468_v57 = vld [vmem:[%s1072_s4 + $0x18] sm:$0xff] }
  0x34   : > { %v780_v26 = vunpack.c.l.bf16 %v779_v25  ;;  %v781_v27 = vunpack.c.h.bf16 %v779_v25  ;;  %v465_v48 = vld [vmem:[%s1072_s4] sm:$0xff]  ;;  %v470_v63 = vld [vmem:[%s1072_s4 + $0x28] sm:$0xff] }
  0x35   : > { %v469_v60 = vld [vmem:[%s1072_s4 + $0x20] sm:$0xff] }
  0x36   : > { %794 = vmatpush.bf16.msra.mxu3 %v767_v13  ;;  %429 = vmatpush.bf16.msra.mxu0 %v767_v13 }
  0x37   : > { %798 = vmatpush.bf16.msra.mxu2 %v775_v14  ;;  %540 = vmatpush.bf16.msra.mxu1 %v775_v14 }
  0x3a   : > { %795 = vmatpush.bf16.msra.mxu3 %v766_v15  ;;  %430 = vmatpush.bf16.msra.mxu0 %v766_v15 }
  0x3b   : > { %799 = vmatpush.bf16.msra.mxu2 %v774_v16  ;;  %541 = vmatpush.bf16.msra.mxu1 %v774_v16 }
  0x3d   : > { %725 = vmatmul.msk.bf16.vlgmr.msra.gmra.mxu3 %vm413_vm1, %v764_v17  ;;  %724 = vmatmul.msk.bf16.vlgmr.msra.gmra.mxu0 %vm413_vm1, %v763_v18 }
  0x3f   : > { %800 = vmatpush.bf16.msra.mxu2 %v773_v19  ;;  %542 = vmatpush.bf16.msra.mxu1 %v773_v19 }
  0x43   : > { %801 = vmatpush.bf16.msra.mxu2 %v772_v21  ;;  %543 = vmatpush.bf16.msra.mxu1 %v772_v21 }
  0x47   : > { %802 = vmatpush.bf16.msra.mxu2 %v771_v22  ;;  %544 = vmatpush.bf16.msra.mxu1 %v771_v22 }
  0x4b   : > { %803 = vmatpush.bf16.msra.mxu2 %v770_v23  ;;  %545 = vmatpush.bf16.msra.mxu1 %v770_v23 }
  0x4d   : > { %726 = vmatmul.msk.bf16.gmra.mxu3 %vm413_vm1, %v765_v20 }
  0xba   : > { %v432_v24 = vpop.f32.mrf.mxu0 }
  0xbb   : > { %v459_v29 = vmul.f32 %v780_v26, %v432_v24 }
  0xc0   : > { %v437_v28 = vpop.f32.mrf.mxu3 }
  0xc1   : > { %v461_v37 = vmul.f32 %v784_v33, %v437_v28 }
  0xc2   : > { %v434_v31 = vpop.f32.mrf.mxu0 }
  0xc3   : > { %v460_v32 = vmul.f32 %v781_v27, %v434_v31 }
  0xc5   : > { %v471_v35 = vpack.c.bf16 %v460_v32, %v459_v29 }
  0xc7   : > { %546 = vmatmul.bf16.vlgmr.msra.gmra.mxu1 %v471_v35 }
  0xc8   : > { %v439_v36 = vpop.f32.mrf.mxu3 }
  0xc9   : > { %v462_v38 = vmul.f32 %v785_v34, %v439_v36 }
  0xcb   : > { %v472_v39 = vpack.c.bf16 %v462_v38, %v461_v37 }
  0xcd   : > { %551 = vmatmul.bf16.vlgmr.msra.gmra.mxu2 %v472_v39 }
  0xd0   : > { %v442_v40 = vpop.f32.mrf.mxu3 }
  0xd1   : > { %v463_v45 = vmul.f32 %v788_v42, %v442_v40 }
  0xd8   : > { %v444_v44 = vpop.f32.mrf.mxu3 }
  0xd9   : > { %v464_v46 = vmul.f32 %v789_v43, %v444_v44 }
  0xdb   : > { %v473_v47 = vpack.c.bf16 %v464_v46, %v463_v45 }
  0xdd   : > { %556 = vmatmul.bf16.gmra.mxu2 %v473_v47 }
 0x144   : > { %v547_v49 = vpop.f32.mrf.mxu1 }
 0x145   : > { %v562_v50 = vadd.f32 %v547_v49, %v465_v48 }
 0x147   : > { %568 = vst.msk [vmem:[%s1072_s4] sm:$0xff] %vm413_vm1, %v562_v50 }
 0x14c   : > { %v549_v52 = vpop.f32.mrf.mxu1 }
 0x14d   : > { %v563_v53 = vadd.f32 %v549_v52, %v466_v51 }
 0x14f   : > { %569 = vst.msk [vmem:[%s1072_s4 + $0x8] sm:$0xff] %vm413_vm1, %v563_v53 }
 0x150   : > { %v552_v55 = vpop.f32.mrf.mxu2 }
 0x151   : > { %v564_v56 = vadd.f32 %v552_v55, %v467_v54 }
 0x153   : > { %570 = vst.msk [vmem:[%s1072_s4 + $0x10] sm:$0xff] %vm413_vm1, %v564_v56 }
 0x158   : > { %v554_v58 = vpop.f32.mrf.mxu2 }
 0x159   : > { %v565_v59 = vadd.f32 %v554_v58, %v468_v57 }
 0x15b   : > { %571 = vst.msk [vmem:[%s1072_s4 + $0x18] sm:$0xff] %vm413_vm1, %v565_v59 }
 0x160   : > { %v557_v61 = vpop.f32.mrf.mxu2 }
 0x161   : > { %v566_v62 = vadd.f32 %v557_v61, %v469_v60 }
 0x163   : > { %572 = vst.msk [vmem:[%s1072_s4 + $0x20] sm:$0xff] %vm413_vm1, %v566_v62 }
 0x168   : > { %v559_v0 = vpop.f32.mrf.mxu2 }
 0x169   : > { %v567_v1 = vadd.f32 %v559_v0, %v470_v63 }
 0x16b   : > { %573 = vst.msk [vmem:[%s1072_s4 + $0x28] sm:$0xff] %vm413_vm1, %v567_v1 }
 0x16c PF: > { %s14_s19 = sadd.s32 1, %s883_s19   ;;  %s1073_s15 = smov %s871_s16 }
 0x16d   : > { %p11_p11 = scmp.ge.s32.totalorder %s14_s19, 4   ;;  %s1074_s16 = smov %s946_s23 }
 0x16e   : > { %s1075_s17 = smov %s879_s18  ;;  %s1076_s18 = smov %s1078_s20 }
 0x16f   :  { %13 = sbr.rel (!%p11_p11) target bundleno = 3 (0x3), region = 125 }

</bundles_post_ra>
